<compile_context>
chip_gen: v7x
topology: tpu7x:2x2x1
jax: 0.10.0
libtpu: 0.0.40
codegen_flags: <defaults>
</compile_context>

<pallas_src>
import jax
import jax.numpy as jnp
import numpy as np
from jax.experimental import pallas as pl
from jax.experimental.pallas import tpu as pltpu


# ----------------------------------------------------------------------------
# Pallas kernel: NewAttention forward for Bt batch elements per grid step.
# ----------------------------------------------------------------------------
def new_attention_kernel(
    mask_ref,  # (Bt, Bt*N) f32 additive block mask: 0 in-block, -1e30 off-block
    v2_ref,    # (Bt*N, V)  bf16 visual feats, objects flattened into rows
    q_ref,     # (Bt, Q)    f32  question feats
    wv_ref,    # (V, H)     bf16 visual_projector weight      (resident VMEM)
    bv_ref,    # (1, H)     f32  visual_projector bias
    wqc_ref,   # (Q, 2H)    bf16 [Wq | Wqn] fused question weights
    bqc_ref,   # (1, 2H)    f32  [bq | bqn]
    wl_ref,    # (1, H)     f32  logits weight as a row
    bl_ref,    # (1,)       f32  logits bias (SMEM scalar)
    wvn_ref,   # (V, H)     bf16 visual_net weight
    bvn_ref,   # (1, H)     f32  visual_net bias
    out_ref,   # (Bt, H)    f32
):
    h = wv_ref.shape[1]
    f32 = jnp.float32
    bf16 = jnp.bfloat16

    v2 = v2_ref[...]                                             # (Bt*N, V) bf16

    # ---- visual projection (MXU), bias + ReLU, recast once to bf16 ---------
    v_proj = jnp.maximum(
        jnp.dot(v2, wv_ref[...], preferred_element_type=f32) + bv_ref[...], 0.0)
    v_proj_bf = v_proj.astype(bf16)                              # (Bt*N, H)

    # ---- fused question-side projections ------------------------------------
    q_both = jnp.maximum(
        jnp.dot(q_ref[...].astype(bf16), wqc_ref[...],
                preferred_element_type=f32) + bqc_ref[...], 0.0)  # (Bt, 2H)
    q_proj = q_both[:, :h]                                       # (Bt, H)
    q_rep = q_both[:, h:]                                        # (Bt, H)

    # ---- logits in lane-major masked-matmul form ----------------------------
    # logits[b, r] = ReLU( sum_h v_proj[r,h] * q_proj[b,h] * wl[h] + bl )
    # Fold wl into q_proj (valid: ReLU applies after the sum), contract H on
    # the MXU, mask rows r that do not belong to batch b.
    s_bf = (q_proj * wl_ref[...]).astype(bf16)                   # (Bt, H)
    raw = jax.lax.dot_general(
        s_bf, v_proj_bf,
        dimension_numbers=(((1,), (1,)), ((), ())),
        preferred_element_type=f32)                              # (Bt, Bt*N)
    logits = jnp.maximum(raw + bl_ref[0], 0.0) + mask_ref[...]   # off-block -> -1e30

    # ---- row-wise (lane) softmax; off-block weights underflow to exactly 0 --
    m = jnp.max(logits, axis=-1, keepdims=True)                  # (Bt, 1)
    e = jnp.exp(logits - m)                                      # (Bt, Bt*N)
    w = e * pl.reciprocal(jnp.sum(e, axis=-1, keepdims=True), approx=True)

    # ---- attention pooling directly on the MXU ------------------------------
    vemb = jnp.dot(w.astype(bf16), v2, preferred_element_type=f32)   # (Bt, V)

    # ---- output heads --------------------------------------------------------
    v_rep = jnp.maximum(
        jnp.dot(vemb.astype(bf16), wvn_ref[...],
                preferred_element_type=f32) + bvn_ref[...], 0.0)  # (Bt, H)

    out_ref[...] = q_rep * v_rep


# ----------------------------------------------------------------------------
# Wrapper
# ----------------------------------------------------------------------------
def _vmem_limit_bytes():
    """Generation-aware VMEM budget: 3/4 of physical, capped below 128 MiB."""
    phys = 128 * 1024 * 1024
    try:
        phys = int(pltpu.get_tpu_info().vmem_capacity_bytes)
    except Exception:
        pass
    return min(int(phys * 3 // 4), 100 * 1024 * 1024)


def new_attention(visual_feats, question_feats, params, *, bt=8):
    """visual_feats: (B, N, V); question_feats: (B, Q); returns (B, H) f32."""
    B, N, V = visual_feats.shape
    Q = question_feats.shape[1]
    H = params["wv"].shape[1]

    assert bt % 8 == 0, "batch tile must be a multiple of 8 (sublane tile)"
    assert (bt * N) % 16 == 0, "bt*N must be 16-aligned (bf16 sublane packing)"
    assert H % 128 == 0, "hidden_size must be a multiple of 128 (lane-aligned fused split)"

    # Pad batch to a multiple of the batch tile (zero rows are numerically benign
    # and are sliced off at the end).
    Bp = ((B + bt - 1) // bt) * bt
    if Bp != B:
        pad = Bp - B
        visual_feats = jnp.pad(visual_feats, ((0, pad), (0, 0), (0, 0)))
        question_feats = jnp.pad(question_feats, ((0, pad), (0, 0)))

    # Visual feats streamed in bf16 (the only large per-step input).
    vis2d = visual_feats.reshape(Bp * N, V).astype(jnp.bfloat16)
    qf = question_feats.astype(jnp.float32)

    wv = params["wv"].astype(jnp.bfloat16)
    wvn = params["wvn"].astype(jnp.bfloat16)
    wqc = jnp.concatenate([params["wq"], params["wqn"]], axis=1).astype(jnp.bfloat16)
    bv = params["bv"].astype(jnp.float32)
    bvn = params["bvn"].astype(jnp.float32)
    bqc = jnp.concatenate([params["bq"], params["bqn"]], axis=1).astype(jnp.float32)
    wl_row = params["wl"].reshape(1, H).astype(jnp.float32)
    bl = params["bl"].reshape(1).astype(jnp.float32)

    # Grid-invariant additive block mask: row r of the flattened visual tile
    # belongs to batch (r // N) within the tile.
    row_batch = jnp.arange(bt * N, dtype=jnp.int32) // N                # (bt*N,)
    col_batch = jnp.arange(bt, dtype=jnp.int32)                         # (bt,)
    mask_bias = jnp.where(row_batch[None, :] == col_batch[:, None],
                          0.0, -1e30).astype(jnp.float32)               # (bt, bt*N)

    grid = (Bp // bt,)
    vmem_space = pltpu.MemorySpace.VMEM

    out = pl.pallas_call(
        new_attention_kernel,
        out_shape=jax.ShapeDtypeStruct((Bp, H), jnp.float32),
        grid_spec=pltpu.PrefetchScalarGridSpec(
            num_scalar_prefetch=0,
            grid=grid,
            in_specs=[
                pl.BlockSpec(memory_space=vmem_space),                 # block mask (resident)
                pl.BlockSpec((bt * N, V), lambda i: (i, 0)),           # visual feats (bf16, streamed)
                pl.BlockSpec((bt, Q), lambda i: (i, 0)),               # question feats (streamed)
                pl.BlockSpec(memory_space=vmem_space),                 # wv   (bf16, resident, single-buffered)
                pl.BlockSpec(memory_space=vmem_space),                 # bv
                pl.BlockSpec(memory_space=vmem_space),                 # [wq|wqn] (bf16)
                pl.BlockSpec(memory_space=vmem_space),                 # [bq|bqn]
                pl.BlockSpec(memory_space=vmem_space),                 # wl row (f32)
                pl.BlockSpec(memory_space=pltpu.MemorySpace.SMEM),     # bl scalar
                pl.BlockSpec(memory_space=vmem_space),                 # wvn (bf16)
                pl.BlockSpec(memory_space=vmem_space),                 # bvn
            ],
            out_specs=pl.BlockSpec((bt, H), lambda i: (i, 0)),
        ),
        compiler_params=pltpu.CompilerParams(
            dimension_semantics=("parallel",),
            vmem_limit_bytes=_vmem_limit_bytes(),
        ),
    )(mask_bias, vis2d, qf, wv, bv, wqc, bqc, wl_row, bl, wvn, bvn)

    return out[:B]


# ----------------------------------------------------------------------------
# Parameter setup (weight-norm folded: W_eff = g * V / ||V||_F), stored (in, out)
# ----------------------------------------------------------------------------
def make_wn_linear(key, in_dim, out_dim, w_dtype=jnp.bfloat16):
    kv, kg, kb = jax.random.split(key, 3)
    v = jax.random.normal(kv, (in_dim, out_dim), jnp.float32) * 0.1
    g = 1.0 + 0.1 * jax.random.normal(kg, (), jnp.float32)
    w_eff = (g * v / jnp.sqrt(jnp.sum(v * v))).astype(w_dtype)
    b = 0.1 * jax.random.normal(kb, (1, out_dim), jnp.float32)
    return w_eff, b


def init_params(key, visual_size, question_size, hidden_size):
    keys = jax.random.split(key, 5)
    wv, bv = make_wn_linear(keys[0], visual_size, hidden_size)
    wq, bq = make_wn_linear(keys[1], question_size, hidden_size)
    wl, bl = make_wn_linear(keys[2], hidden_size, 1, w_dtype=jnp.float32)
    wqn, bqn = make_wn_linear(keys[3], question_size, hidden_size)
    wvn, bvn = make_wn_linear(keys[4], visual_size, hidden_size)
    return dict(wv=wv, bv=bv, wq=wq, bq=bq, wl=wl, bl=bl,
                wqn=wqn, bqn=bqn, wvn=wvn, bvn=bvn)


# ----------------------------------------------------------------------------
# Pure-JAX reference (mirrors the PyTorch forward in eval mode, with the same
# bf16-weight / bf16-visual / f32-accumulation quantization as the kernel).
# ----------------------------------------------------------------------------
def reference(visual_feats, question_feats, p):
    f32 = jnp.float32
    bf16 = jnp.bfloat16
    relu = lambda x: jnp.maximum(x, 0.0)

    def lin(x, w, b):
        y = jnp.dot(x.astype(bf16), w.astype(bf16), preferred_element_type=f32)
        return relu(y + b.astype(f32))

    v_bf = visual_feats.astype(bf16)                               # kernel streams bf16
    v_proj = lin(v_bf, p["wv"], p["bv"])                           # (B, N, H)
    q_proj = lin(question_feats, p["wq"], p["bq"])                 # (B, H)
    joint = v_proj * q_proj[:, None, :]                            # (B, N, H)
    logits = relu(jnp.sum(joint * p["wl"].astype(f32).reshape(1, 1, -1),
                          axis=-1, keepdims=True)
                  + p["bl"].astype(f32))                           # (B, N, 1)
    w = jax.nn.softmax(logits, axis=1)
    visual_emb = jnp.sum(w * v_bf.astype(f32), axis=1)             # (B, V)
    q_rep = lin(question_feats, p["wqn"], p["bqn"])                # (B, H)
    v_rep = lin(visual_emb, p["wvn"], p["bvn"])                    # (B, H)
    return q_rep * v_rep


if __name__ == "__main__":
    B, N = 16, 8
    visual_size, question_size, hidden_size = 32, 32, 128

    key = jax.random.PRNGKey(0)
    k1, k2, k3 = jax.random.split(key, 3)
    visual_feats = jax.random.normal(k1, (B, N, visual_size), jnp.float32)
    question_feats = jax.random.normal(k2, (B, question_size), jnp.float32)
    params = init_params(k3, visual_size, question_size, hidden_size)

    out = new_attention(visual_feats, question_feats, params, bt=8)
    out = jax.block_until_ready(out)

    ref = reference(visual_feats, question_feats, params)
    np.testing.assert_allclose(np.asarray(out), np.asarray(ref),
                               rtol=2e-2, atol=2e-3)
    print("KERNEL_OK")
</pallas_src>

<mosaic_0001>
module attributes {stable_mosaic.version = 11 : i64} {
  func.func @new_attention_kernel(%arg0: i32, %arg1: memref<8x64xf32, #tpu.memory_space<vmem>>, %arg2: memref<64x32xbf16, #tpu.memory_space<vmem>>, %arg3: memref<8x32xf32, #tpu.memory_space<vmem>>, %arg4: memref<32x128xbf16, #tpu.memory_space<vmem>>, %arg5: memref<1x128xf32, #tpu.memory_space<vmem>>, %arg6: memref<32x256xbf16, #tpu.memory_space<vmem>>, %arg7: memref<1x256xf32, #tpu.memory_space<vmem>>, %arg8: memref<1x128xf32, #tpu.memory_space<vmem>>, %arg9: memref<1xf32, #tpu.memory_space<smem>>, %arg10: memref<32x128xbf16, #tpu.memory_space<vmem>>, %arg11: memref<1x128xf32, #tpu.memory_space<vmem>>, %arg12: memref<8x128xf32, #tpu.memory_space<vmem>>) attributes {dimension_semantics = [#tpu.dimension_semantics<parallel>], iteration_bounds = array<i64: 2>, scalar_prefetch = 0 : i64, scratch_operands = 0 : i64, tpu.core_type = #tpu.core_type<tc>, window_params = [{pipeline_mode = #tpu.pipeline_mode<synchronous>, transform_indices = @transform_0, window_bounds = array<i64: 8, 64>}, {transform_indices = @transform_1, window_bounds = array<i64: 64, 32>}, {transform_indices = @transform_2, window_bounds = array<i64: 8, 32>}, {pipeline_mode = #tpu.pipeline_mode<synchronous>, transform_indices = @transform_3, window_bounds = array<i64: 32, 128>}, {pipeline_mode = #tpu.pipeline_mode<synchronous>, transform_indices = @transform_4, window_bounds = array<i64: 1, 128>}, {pipeline_mode = #tpu.pipeline_mode<synchronous>, transform_indices = @transform_5, window_bounds = array<i64: 32, 256>}, {pipeline_mode = #tpu.pipeline_mode<synchronous>, transform_indices = @transform_6, window_bounds = array<i64: 1, 256>}, {pipeline_mode = #tpu.pipeline_mode<synchronous>, transform_indices = @transform_7, window_bounds = array<i64: 1, 128>}, {transform_indices = @transform_8, window_bounds = array<i64: 1>}, {pipeline_mode = #tpu.pipeline_mode<synchronous>, transform_indices = @transform_9, window_bounds = array<i64: 32, 128>}, {pipeline_mode = #tpu.pipeline_mode<synchronous>, transform_indices = @transform_10, window_bounds = array<i64: 1, 128>}, {transform_indices = @transform_11, window_bounds = array<i64: 8, 128>}]} {
    %c0 = arith.constant 0 : index
    %c0_0 = arith.constant 0 : index
    %0 = vector.load %arg2[%c0, %c0_0] : memref<64x32xbf16, #tpu.memory_space<vmem>>, vector<64x32xbf16>
    %c0_1 = arith.constant 0 : index
    %c0_2 = arith.constant 0 : index
    %1 = vector.load %arg4[%c0_1, %c0_2] : memref<32x128xbf16, #tpu.memory_space<vmem>>, vector<32x128xbf16>
    %cst = arith.constant dense<0.000000e+00> : vector<64x128xf32>
    %2 = tpu.matmul %0, %1, %cst {dimension_numbers = #tpu.dot_dimension_numbers<[1], [0], [0], [1], [0, 0, 1, 1], [], []>} : vector<64x32xbf16>, vector<32x128xbf16>, vector<64x128xf32> -> vector<64x128xf32>
    %c0_3 = arith.constant 0 : index
    %c0_4 = arith.constant 0 : index
    %3 = vector.load %arg5[%c0_3, %c0_4] : memref<1x128xf32, #tpu.memory_space<vmem>>, vector<1x128xf32>
    %4 = vector.broadcast %3 : vector<1x128xf32> to vector<64x128xf32>
    %5 = arith.addf %2, %4 : vector<64x128xf32>
    %cst_5 = arith.constant 0.000000e+00 : f32
    %6 = vector.broadcast %cst_5 : f32 to vector<64x128xf32>
    %7 = arith.maximumf %5, %6 : vector<64x128xf32>
    %8 = arith.truncf %7 : vector<64x128xf32> to vector<64x128xbf16>
    %c0_6 = arith.constant 0 : index
    %c0_7 = arith.constant 0 : index
    %9 = vector.load %arg3[%c0_6, %c0_7] : memref<8x32xf32, #tpu.memory_space<vmem>>, vector<8x32xf32>
    %10 = arith.truncf %9 : vector<8x32xf32> to vector<8x32xbf16>
    %c0_8 = arith.constant 0 : index
    %c0_9 = arith.constant 0 : index
    %11 = vector.load %arg6[%c0_8, %c0_9] : memref<32x256xbf16, #tpu.memory_space<vmem>>, vector<32x256xbf16>
    %cst_10 = arith.constant dense<0.000000e+00> : vector<8x256xf32>
    %12 = tpu.matmul %10, %11, %cst_10 {dimension_numbers = #tpu.dot_dimension_numbers<[1], [0], [0], [1], [0, 0, 1, 1], [], []>} : vector<8x32xbf16>, vector<32x256xbf16>, vector<8x256xf32> -> vector<8x256xf32>
    %c0_11 = arith.constant 0 : index
    %c0_12 = arith.constant 0 : index
    %13 = vector.load %arg7[%c0_11, %c0_12] : memref<1x256xf32, #tpu.memory_space<vmem>>, vector<1x256xf32>
    %14 = vector.broadcast %13 : vector<1x256xf32> to vector<8x256xf32>
    %15 = arith.addf %12, %14 : vector<8x256xf32>
    %cst_13 = arith.constant 0.000000e+00 : f32
    %16 = vector.broadcast %cst_13 : f32 to vector<8x256xf32>
    %17 = arith.maximumf %15, %16 : vector<8x256xf32>
    %18 = vector.extract_strided_slice %17 {offsets = [0, 0], sizes = [8, 128], strides = [1, 1]} : vector<8x256xf32> to vector<8x128xf32>
    %19 = vector.extract_strided_slice %17 {offsets = [0, 128], sizes = [8, 128], strides = [1, 1]} : vector<8x256xf32> to vector<8x128xf32>
    %c0_14 = arith.constant 0 : index
    %c0_15 = arith.constant 0 : index
    %20 = vector.load %arg8[%c0_14, %c0_15] : memref<1x128xf32, #tpu.memory_space<vmem>>, vector<1x128xf32>
    %21 = vector.broadcast %20 : vector<1x128xf32> to vector<8x128xf32>
    %22 = arith.mulf %18, %21 : vector<8x128xf32>
    %23 = arith.truncf %22 : vector<8x128xf32> to vector<8x128xbf16>
    %cst_16 = arith.constant dense<0.000000e+00> : vector<8x64xf32>
    %24 = tpu.matmul %23, %8, %cst_16 {dimension_numbers = #tpu.dot_dimension_numbers<[1], [1], [0], [0], [0, 0, 1, 0], [], []>} : vector<8x128xbf16>, vector<64x128xbf16>, vector<8x64xf32> -> vector<8x64xf32>
    %c0_17 = arith.constant 0 : index
    %25 = memref.load %arg9[%c0_17] : memref<1xf32, #tpu.memory_space<smem>>
    %26 = vector.broadcast %25 : f32 to vector<8x64xf32>
    %27 = arith.addf %24, %26 : vector<8x64xf32>
    %cst_18 = arith.constant 0.000000e+00 : f32
    %28 = vector.broadcast %cst_18 : f32 to vector<8x64xf32>
    %29 = arith.maximumf %27, %28 : vector<8x64xf32>
    %c0_19 = arith.constant 0 : index
    %c0_20 = arith.constant 0 : index
    %30 = vector.load %arg1[%c0_19, %c0_20] : memref<8x64xf32, #tpu.memory_space<vmem>>, vector<8x64xf32>
    %31 = arith.addf %29, %30 : vector<8x64xf32>
    %cst_21 = arith.constant dense<0xFF800000> : vector<8xf32>
    %32 = vector.multi_reduction <maximumf>, %31, %cst_21 [1] : vector<8x64xf32> to vector<8xf32>
    %33 = vector.shape_cast %32 : vector<8xf32> to vector<8x1xf32>
    %34 = vector.broadcast %33 : vector<8x1xf32> to vector<8x64xf32>
    %35 = arith.subf %31, %34 : vector<8x64xf32>
    %36 = math.exp %35 : vector<8x64xf32>
    %cst_22 = arith.constant dense<0.000000e+00> : vector<8xf32>
    %37 = vector.multi_reduction <add>, %36, %cst_22 [1] : vector<8x64xf32> to vector<8xf32>
    %38 = vector.shape_cast %37 : vector<8xf32> to vector<8x1xf32>
    %39 = tpu.reciprocal %38 {approx = true} : vector<8x1xf32> -> vector<8x1xf32>
    %40 = vector.broadcast %39 : vector<8x1xf32> to vector<8x64xf32>
    %41 = arith.mulf %36, %40 : vector<8x64xf32>
    %42 = arith.truncf %41 : vector<8x64xf32> to vector<8x64xbf16>
    %cst_23 = arith.constant dense<0.000000e+00> : vector<8x32xf32>
    %43 = tpu.matmul %42, %0, %cst_23 {dimension_numbers = #tpu.dot_dimension_numbers<[1], [0], [0], [1], [0, 0, 1, 1], [], []>} : vector<8x64xbf16>, vector<64x32xbf16>, vector<8x32xf32> -> vector<8x32xf32>
    %44 = arith.truncf %43 : vector<8x32xf32> to vector<8x32xbf16>
    %c0_24 = arith.constant 0 : index
    %c0_25 = arith.constant 0 : index
    %45 = vector.load %arg10[%c0_24, %c0_25] : memref<32x128xbf16, #tpu.memory_space<vmem>>, vector<32x128xbf16>
    %cst_26 = arith.constant dense<0.000000e+00> : vector<8x128xf32>
    %46 = tpu.matmul %44, %45, %cst_26 {dimension_numbers = #tpu.dot_dimension_numbers<[1], [0], [0], [1], [0, 0, 1, 1], [], []>} : vector<8x32xbf16>, vector<32x128xbf16>, vector<8x128xf32> -> vector<8x128xf32>
    %c0_27 = arith.constant 0 : index
    %c0_28 = arith.constant 0 : index
    %47 = vector.load %arg11[%c0_27, %c0_28] : memref<1x128xf32, #tpu.memory_space<vmem>>, vector<1x128xf32>
    %48 = vector.broadcast %47 : vector<1x128xf32> to vector<8x128xf32>
    %49 = arith.addf %46, %48 : vector<8x128xf32>
    %cst_29 = arith.constant 0.000000e+00 : f32
    %50 = vector.broadcast %cst_29 : f32 to vector<8x128xf32>
    %51 = arith.maximumf %49, %50 : vector<8x128xf32>
    %52 = arith.mulf %19, %51 : vector<8x128xf32>
    %c0_30 = arith.constant 0 : index
    %c0_31 = arith.constant 0 : index
    %53 = vector.load %arg12[%c0_30, %c0_31] : memref<8x128xf32, #tpu.memory_space<vmem>>, vector<8x128xf32>
    tpu.vector_store %arg12[%c0_30, %c0_31], %52 {strides = array<i32>} : memref<8x128xf32, #tpu.memory_space<vmem>>, vector<8x128xf32>,
    return
  }
  func.func @transform_0(%arg0: i32) -> (i32, i32) {
    %c0_i32 = arith.constant 0 : i32
    %c0_i32_0 = arith.constant 0 : i32
    %c0_i32_1 = arith.constant 0 : i32
    return %c0_i32, %c0_i32_0 : i32, i32
  }
  func.func @transform_1(%arg0: i32) -> (i32, i32) {
    %c0_i32 = arith.constant 0 : i32
    %c0_i32_0 = arith.constant 0 : i32
    return %arg0, %c0_i32 : i32, i32
  }
  func.func @transform_2(%arg0: i32) -> (i32, i32) {
    %c0_i32 = arith.constant 0 : i32
    %c0_i32_0 = arith.constant 0 : i32
    return %arg0, %c0_i32 : i32, i32
  }
  func.func @transform_3(%arg0: i32) -> (i32, i32) {
    %c0_i32 = arith.constant 0 : i32
    %c0_i32_0 = arith.constant 0 : i32
    %c0_i32_1 = arith.constant 0 : i32
    return %c0_i32, %c0_i32_0 : i32, i32
  }
  func.func @transform_4(%arg0: i32) -> (i32, i32) {
    %c0_i32 = arith.constant 0 : i32
    %c0_i32_0 = arith.constant 0 : i32
    %c0_i32_1 = arith.constant 0 : i32
    return %c0_i32, %c0_i32_0 : i32, i32
  }
  func.func @transform_5(%arg0: i32) -> (i32, i32) {
    %c0_i32 = arith.constant 0 : i32
    %c0_i32_0 = arith.constant 0 : i32
    %c0_i32_1 = arith.constant 0 : i32
    return %c0_i32, %c0_i32_0 : i32, i32
  }
  func.func @transform_6(%arg0: i32) -> (i32, i32) {
    %c0_i32 = arith.constant 0 : i32
    %c0_i32_0 = arith.constant 0 : i32
    %c0_i32_1 = arith.constant 0 : i32
    return %c0_i32, %c0_i32_0 : i32, i32
  }
  func.func @transform_7(%arg0: i32) -> (i32, i32) {
    %c0_i32 = arith.constant 0 : i32
    %c0_i32_0 = arith.constant 0 : i32
    %c0_i32_1 = arith.constant 0 : i32
    return %c0_i32, %c0_i32_0 : i32, i32
  }
  func.func @transform_8(%arg0: i32) -> i32 {
    %c0_i32 = arith.constant 0 : i32
    %c0_i32_0 = arith.constant 0 : i32
    return %c0_i32 : i32
  }
  func.func @transform_9(%arg0: i32) -> (i32, i32) {
    %c0_i32 = arith.constant 0 : i32
    %c0_i32_0 = arith.constant 0 : i32
    %c0_i32_1 = arith.constant 0 : i32
    return %c0_i32, %c0_i32_0 : i32, i32
  }
  func.func @transform_10(%arg0: i32) -> (i32, i32) {
    %c0_i32 = arith.constant 0 : i32
    %c0_i32_0 = arith.constant 0 : i32
    %c0_i32_1 = arith.constant 0 : i32
    return %c0_i32, %c0_i32_0 : i32, i32
  }
  func.func @transform_11(%arg0: i32) -> (i32, i32) {
    %c0_i32 = arith.constant 0 : i32
    %c0_i32_0 = arith.constant 0 : i32
    return %arg0, %c0_i32 : i32, i32
  }
}

</mosaic_0001>

<bundles_post_ra>
// kernel: tpu_custom_call.1
= control target key start
LH: loop header
LB: loop body
LE: loop exit
PB: predicated region body
PF: predicated region fallthrough
CT: control target
= control target key end

     0   :  { %s2298_s0 = inlined_call_operand.hbm [shape: f32[8,64], index: 0, kind: input, shape index: {}]   ;;  %s2299_s1 = inlined_call_operand.hbm [shape: bf16[128,32], index: 1, kind: input, shape index: {}]   ;;  %s2300_s2 = inlined_call_operand.hbm [shape: f32[16,32], index: 2, kind: input, shape index: {}]   ;;  %s2301_s3 = inlined_call_operand.hbm [shape: bf16[32,128], index: 3, kind: input, shape index: {}]   ;;  %s2302_s4 = inlined_call_operand.hbm [shape: f32[1,128], index: 4, kind: input, shape index: {}]   ;;  %s2303_s5 = inlined_call_operand.hbm [shape: bf16[32,256], index: 5, kind: input, shape index: {}]   ;;  %s2304_s6 = inlined_call_operand.hbm [shape: f32[1,256], index: 6, kind: input, shape index: {}]   ;;  %s2305_s7 = inlined_call_operand.hbm [shape: f32[1,128], index: 7, kind: input, shape index: {}]   ;;  %s2306_s8 = inlined_call_operand.<no memory space> [shape: f32[1], index: 8, kind: input, shape index: {}]   ;;  %s2307_s9 = inlined_call_operand.hbm [shape: bf16[32,128], index: 9, kind: input, shape index: {}]   ;;  %s2308_s10 = inlined_call_operand.hbm [shape: f32[1,128], index: 10, kind: input, shape index: {}]   ;;  %s2309_s11 = inlined_call_operand.hbm [shape: f32[16,128], index: 11, kind: output, shape index: {}]  }
   0x1   :  { %2330 = sst [smem:[#allocation33_spill]] %s2299_s1 }
   0x2   :  { %2331 = sst [smem:[#allocation34_spill]] %s2301_s3 }
   0x3   :  { %2332 = sst [smem:[#allocation35_spill]] %s2303_s5 }
   0x4   :  { %2333 = sst [smem:[#allocation36_spill]] %s2305_s7 }
   0x5   :  { %2334 = sst [smem:[#allocation37_spill]] %s2309_s11 }
   0x6   :  { %16 = sst [smem:[#allocation2]] %s2306_s8 }
   0x7   :  { %17 = vsyncpa [#allocation4], 0 }
   0x8   :  { %18 = vsyncpa [#allocation7], 0 }
   0x9   :  { %20 = vsyncpa [#allocation7 + $0x1], 0 }
   0xa   :  { %21 = vsyncpa [#allocation10], 0 }
   0xb   :  { %22 = vsyncpa [#allocation13], 0 }
   0xc   :  { %23 = vsyncpa [#allocation16], 0 }
   0xd   :  { %24 = vsyncpa [#allocation19], 0 }
   0xe   :  { %25 = vsyncpa [#allocation5], 0 }
   0xf   :  { %27 = vsyncpa [#allocation5 + $0x1], 0  ;;  %s1869_s19 = smov 0   ;;  %s1871_s20 = smov 0  }
  0x10   :  { %s1873_s21 = smov 0   ;;  %s1875_s22 = smov 0  }
  0x11 LB: > { %2335 = sst [smem:[#allocation28_spill]] %s1774_s19  ;;  %s1788_s8 = smov [#allocation9]   ;;  %s1786_s22 = sphi %s1875_s22, %s2379_s22   ;;  %s1782_s21 = sphi %s1873_s21, %s2383_s21   ;;  %s1778_s20 = sphi %s1871_s20, %s2382_s20   ;;  %s1774_s19 = sphi %s1869_s19, %s2381_s19  }
  0x12   : > { %s328_s23 = sshll.u32 %s1788_s8, 4  ;;  %s1890_s24 = sadd.s32 4294967295, %s1786_s22   ;;  %s1895_s23 = int_to_ptr.vmem [resolvable:$true] %s328_s23 }
  0x13   : > { %p1142_p0 = scmp.ge.s32.totalorder %s1786_s22, 1  ;;  %p2314_p1 = scmp.eq.s32.totalorder %s1890_s24, 0 }
  0x14   : > { %p305_p2 = scmp.lt.s32.totalorder %s1786_s22, 3  ;;  %s1789_s26 = smov [#allocation12]  }
  0x15   : > { %s352_s27 = sshll.u32 %s1789_s26, 4  ;;  %s1790_s29 = smov [#allocation15]   ;;  %s1910_s27 = int_to_ptr.vmem [resolvable:$true] %s352_s27 }
  0x16   : > { %p1897_p3 = pnand %p1142_p0, %p305_p2  ;;  %s1912_s30 = sshll.u32 %s1790_s29, 4  ;;  %s378_s30 = int_to_ptr.vmem [resolvable:$true] %s1912_s30 }
  0x17   : > { %s2339_s3 = sld [smem:[#allocation34_spill]] }
  0x18   : > { %s2336_s25 = scalar_select %p1897_p3, 1, 0 }
  0x19   : > { %p1297_p5 = pneg %p1897_p3 }
  0x1a   : > { %2337 = sst [smem:[#allocation29_spill]] %s2336_s25 }
  0x1b   : > { %p1906_p6 = pnand %p1297_p5, %p2314_p1 }
  0x1d   : > { %s2338_s28 = scalar_select %p1906_p6, 1, 0 }
  0x1e   : > { %s1416_s14 = scalar_lea.hbm %s2339_s3, 256  ;;  %p1922_p8 = pneg %p1906_p6 }
  0x1f   : > { %p1417_p7 = scmp.ne.s32.totalorder %s2339_s3, %s1416_s14  ;;  %p1423_p11 = scmp.lt.u32.totalorder %s1416_s14, %s2339_s3 }
  0x21   : > { %p1419_p9 = pnand %p1922_p8, %p1417_p7 }
  0x23   : > { %p1420_p10 = pneg %p1419_p9 }
  0x25   : > { %p1425_p12 = pnand %p1423_p11, %p1420_p10 }
  0x27   : > { %1428 = shalt.err (!%p1425_p12)
}
  0x28   : > { %s1429_s26 = scalar_lea.vmem %s1895_s23, 256  ;;  %p1437_p5 = scmp.lt.s32.totalorder %s1895_s23, %s1895_s23 }
  0x29   : > { %p1430_p13 = scmp.ne.s32.totalorder %s1895_s23, %s1429_s26  ;;  %p1438_p4 = scmp.lt.s32.totalorder %s1429_s26, %s1429_s26 }
  0x2b   : > { %p1432_p0 = pnand %p1430_p13, %p1922_p8  ;;  %p1439_p7 = por %p1438_p4, %p1437_p5 }
  0x2d   : > { %p1433_p2 = pneg %p1432_p0 }
  0x2f   : > { %p1440_p9 = pnand %p1439_p7, %p1433_p2 }
  0x31   : > { %1443 = shalt.err (!%p1440_p9)
}
  0x32   : > { %s2312_s29 = smov 64   ;;  %s2316_s12 = smov 4  }
  0x33   : > { %1303 = dma.hbm_to_vmem [thread:$0]  (!%p1906_p6), %s2339_s3, 256, %s1895_s23, [#allocation10], %s2312_s29, %s2312_s29, %s2316_s12  }
  0x34   : > { %s2341_s5 = sld [smem:[#allocation35_spill]] }
  0x3a   : > { %s1444_s18 = scalar_lea.hbm %s2341_s5, 512 }
  0x3b   : > { %p1445_p4 = scmp.ne.s32.totalorder %s2341_s5, %s1444_s18  ;;  %p1451_p12 = scmp.lt.u32.totalorder %s1444_s18, %s2341_s5 }
  0x3d   : > { %p1447_p10 = pnand %p1445_p4, %p1922_p8 }
  0x3f   : > { %p1448_p11 = pneg %p1447_p10 }
  0x41   : > { %p1453_p13 = pnand %p1451_p12, %p1448_p11 }
  0x43   : > { %1456 = shalt.err (!%p1453_p13)
}
  0x44   : > { %s1457_s23 = scalar_lea.vmem %s1910_s27, 512  ;;  %p1465_p7 = scmp.lt.s32.totalorder %s1910_s27, %s1910_s27 }
  0x45   : > { %p1458_p0 = scmp.ne.s32.totalorder %s1910_s27, %s1457_s23  ;;  %p1466_p9 = scmp.lt.s32.totalorder %s1457_s23, %s1457_s23 }
  0x47   : > { %p1460_p2 = pnand %p1458_p0, %p1922_p8  ;;  %p1467_p4 = por %p1466_p9, %p1465_p7 }
  0x49   : > { %p1461_p5 = pneg %p1460_p2 }
  0x4b   : > { %p1468_p10 = pnand %p1467_p4, %p1461_p5 }
  0x4d   : > { %1471 = shalt.err (!%p1468_p10)
}
  0x4e   : > { %s1793_s13 = smov 128   ;;  %s1794_s11 = smov 8  }
  0x4f   : > { %1309 = dma.hbm_to_vmem [thread:$0]  (!%p1906_p6), %s2341_s5, 512, %s1910_s27, [#allocation13], %s1793_s13, %s1793_s13, %s1794_s11  }
  0x50   : > { %s2342_s7 = sld [smem:[#allocation36_spill]] }
  0x56   : > { %s1472_s18 = scalar_lea.hbm %s2342_s7, 16 }
  0x57   : > { %p1473_p11 = scmp.ne.s32.totalorder %s2342_s7, %s1472_s18  ;;  %p1479_p0 = scmp.lt.u32.totalorder %s1472_s18, %s2342_s7 }
  0x59   : > { %p1475_p12 = pnand %p1473_p11, %p1922_p8 }
  0x5b   : > { %p1476_p13 = pneg %p1475_p12 }
  0x5d   : > { %p1481_p2 = pnand %p1479_p0, %p1476_p13 }
  0x5f   : > { %1484 = shalt.err (!%p1481_p2)
}
  0x60   : > { %s1485_s25 = scalar_lea.vmem %s378_s30, 16  ;;  %s1492_s27 = scalar_lea.vmem %s378_s30, 32 }
  0x61   : > { %p1486_p5 = scmp.ne.s32.totalorder %s378_s30, %s1485_s25  ;;  %p1493_p4 = scmp.lt.s32.totalorder %s378_s30, %s378_s30 }
  0x62   : > { %p1494_p10 = scmp.lt.s32.totalorder %s1492_s27, %s1485_s25 }
  0x63   : > { %p1488_p7 = pnand %p1486_p5, %p1922_p8 }
  0x64   : > { %p1495_p1 = por %p1494_p10, %p1493_p4 }
  0x65   : > { %p1489_p9 = pneg %p1488_p7 }
  0x67   : > { %p1496_p3 = pnand %p1495_p1, %p1489_p9 }
  0x69   : > { %1499 = shalt.err (!%p1496_p3)
}
  0x6a   : > { %1315 = dma.hbm_to_vmem [thread:$0]  (!%p1906_p6), %s2342_s7, 16, %s378_s30, [#allocation16]  }
  0x6b   : > { %s1141_s29 = sadd.s32 4294967294, %s1786_s22   ;;  %s1990_s14 = sadd.s32 1, %s1786_s22  }
  0x6c   : > { %2343 = sst [smem:[#allocation30_spill]] %s1990_s14  ;;  %s61_s15 = sadd.s32 1, %s1782_s21 }
  0x6d   : > { %s58_s16 = ssub.s32 %s1786_s22, %s1990_s14  ;;  %p68_p1 = scmp.ne.s32.totalorder %s1782_s21, %s1778_s20 }
  0x6e   : > { %p59_p3 = scmp.eq.s32.totalorder %s58_s16, 0  ;;  %p69_p11 = scmp.eq.s32.totalorder %s1786_s22, 0 }
  0x6f   : > { %p74_p12 = scmp.ne.s32.totalorder %s1778_s20, %s1774_s19  ;;  %p292_p13 = scmp.eq.s32.totalorder %s1890_s24, 1 }
  0x70   : > { %s2002_s18 = scalar_select %p59_p3, %s1782_s21, %s61_s15  }
  0x71   : > { %p70_p0 = por %p69_p11, %p68_p1  ;;  %p2345_p2 = scmp.eq.s32.totalorder %s1890_s24, 0 }
  0x72   : > { %2344 = sst [smem:[#allocation31_spill]] %s2002_s18  ;;  %p2010_p7 = por %p292_p13, %p68_p1 }
  0x73   : > { %p2006_p5 = por %p2345_p2, %p74_p12  ;;  %p298_p9 = scmp.eq.s32.totalorder %s1141_s29, 1 }
  0x74   : > { %s2347_s8 = scalar_select %p2010_p7, 1, 0 }
  0x75   : > { %s2346_s30 = scalar_select %p2006_p5, 1, 0 }
  0x76   : > { %p1341_p4 = scmp.lt.s32.totalorder %s1786_s22, 2  ;;  %s415_s26 = sand.u32 1, %s1786_s22  }
  0x77   : > { %p2016_p10 = por %p298_p9, %p74_p12  ;;  %s2318_s25 = sand.u32 1, %s1782_s21  }
  0x78   : > { %s1195_s27 = sshll.u32 %s1786_s22, 9  ;;  %s1152_s13 = sshll.u32 %s2318_s25, 5 }
  0x79   : > { %s2348_s23 = scalar_select %p2016_p10, 1, 0 }
  0x7a   : > { %s2350_s1 = sld [smem:[#allocation33_spill]]  ;;  %p2029_p1 = pnand %p1341_p4, %p70_p0 }
  0x7b   : > { %2349 = sst [smem:[#allocation32_spill]] %s2348_s23  ;;  %s419_s12 = scalar_lea.vmem [#allocation6], %s1152_s13 }
  0x7c   : > { %s2351_s29 = scalar_select %p2029_p1, 1, 0 }
  0x7d   : > { %s426_s3 = sshll.u32 %s419_s12, 4  ;;  %s2035_s25 = scalar_lea.sflag [#allocation7], %s415_s26  ;;  %s2033_s3 = int_to_ptr.vmem [resolvable:$true] %s426_s3 }
  0x7e   : > { %p2327_p11 = pneg %p2029_p1 }
  0x80   : > { %s2027_s16 = scalar_lea.hbm %s2350_s1, %s1195_s27  ;;  %s1505_s15 = scalar_lea.hbm %s2350_s1, 1024 }
  0x81   : > { %s1500_s5 = scalar_lea.hbm %s2027_s16, 512  ;;  %p1506_p0 = scmp.lt.u32.totalorder %s2027_s16, %s2350_s1 }
  0x82   : > { %p1501_p3 = scmp.ne.s32.totalorder %s2027_s16, %s1500_s5  ;;  %p1507_p2 = scmp.lt.u32.totalorder %s1505_s15, %s1500_s5 }
  0x83   : > { %p1509_p4 = scmp.lt.u32.totalorder %s1500_s5, %s2027_s16 }
  0x84   : > { %p1503_p12 = pnand %p2327_p11, %p1501_p3  ;;  %p1508_p9 = por %p1507_p2, %p1506_p0 }
  0x86   : > { %p1504_p13 = pneg %p1503_p12  ;;  %p1510_p10 = por %p1509_p4, %p1508_p9 }
  0x88   : > { %p1511_p7 = pnand %p1510_p10, %p1504_p13 }
  0x8a   : > { %1514 = shalt.err (!%p1511_p7)
}
  0x8b   : > { %s1515_s12 = scalar_lea.vmem %s2033_s3, 512  ;;  %s1795_s26 = smov [#allocation6]  }
  0x8c   : > { %p1516_p3 = scmp.ne.s32.totalorder %s2033_s3, %s1515_s12  ;;  %s1520_s13 = sshll.u32 %s1795_s26, 4  ;;  %s1521_s13 = int_to_ptr.vmem [resolvable:$false] %s1520_s13 }
  0x8d   : > { %s1522_s7 = scalar_lea.vmem %s1521_s13, 1024  ;;  %p1523_p6 = scmp.lt.s32.totalorder %s2033_s3, %s1521_s13 }
  0x8e   : > { %p1518_p12 = pnand %p1516_p3, %p2327_p11  ;;  %p1524_p0 = scmp.lt.s32.totalorder %s1522_s7, %s1515_s12 }
  0x90   : > { %p1519_p5 = pneg %p1518_p12  ;;  %p1525_p2 = por %p1524_p0, %p1523_p6 }
  0x92   : > { %p1526_p9 = pnand %p1525_p2, %p1519_p5 }
  0x94   : > { %1529 = shalt.err (!%p1526_p9)
}
  0x95   : > { %s2352_s5 = smov 4   ;;  %s2353_s18 = smov 64  }
  0x96   : > { %1325 = dma.hbm_to_vmem [thread:$0]  (!%p2029_p1), %s2027_s16, 512, %s2033_s3, %s2035_s25, %s2353_s18, %s2353_s18, %s2352_s5  }
  0x97   : > { %s1796_s27 = smov [#allocation3]   ;;  %s1797_s15 = smov [#allocation11]  }
  0x98   : > { %s318_s11 = sshll.u32 %s1796_s27, 4  ;;  %s342_s26 = sshll.u32 %s1797_s15, 4  ;;  %s319_s11 = int_to_ptr.vmem [resolvable:$true] %s318_s11  ;;  %s343_s26 = int_to_ptr.vmem [resolvable:$true] %s342_s26 }
  0x99   : > { %s1530_s7 = scalar_lea.hbm %s2298_s0, 128 }
  0x9a   : > { %p1531_p6 = scmp.ne.s32.totalorder %s2298_s0, %s1530_s7  ;;  %p1537_p10 = scmp.lt.u32.totalorder %s1530_s7, %s2298_s0 }
  0x9c   : > { %p1533_p5 = pnand %p1531_p6, %p1922_p8 }
  0x9e   : > { %p1534_p7 = pneg %p1533_p5 }
  0xa0   : > { %p1539_p13 = pnand %p1537_p10, %p1534_p7 }
  0xa2   : > { %1542 = shalt.err (!%p1539_p13)
}
  0xa3   : > { %s1543_s3 = scalar_lea.vmem %s319_s11, 128  ;;  %p1551_p0 = scmp.lt.s32.totalorder %s319_s11, %s319_s11 }
  0xa4   : > { %p1544_p4 = scmp.ne.s32.totalorder %s319_s11, %s1543_s3  ;;  %p1552_p2 = scmp.lt.s32.totalorder %s1543_s3, %s1543_s3 }
  0xa6   : > { %p1546_p3 = pnand %p1544_p4, %p1922_p8  ;;  %p1553_p9 = por %p1552_p2, %p1551_p0 }
  0xa8   : > { %p1547_p12 = pneg %p1546_p3 }
  0xaa   : > { %p1554_p11 = pnand %p1553_p9, %p1547_p12 }
  0xac   : > { %1557 = shalt.err (!%p1554_p11)
}
  0xad   : > { %p2354_p6 = scmp.ne.s32.totalorder %s2338_s28, 0  ;;  %s1558_s16 = scalar_lea.hbm %s2302_s4, 16 }
  0xae   : > { %p1559_p5 = scmp.ne.s32.totalorder %s2302_s4, %s1558_s16  ;;  %p1565_p11 = scmp.lt.u32.totalorder %s1558_s16, %s2302_s4 }
  0xaf   : > { %1300 = dma.hbm_to_vmem [thread:$0]  (!%p2354_p6), %s2298_s0, 128, %s319_s11, [#allocation4]  }
  0xb0   : > { %p1561_p7 = pnand %p1559_p5, %p1922_p8 }
  0xb2   : > { %p1562_p10 = pneg %p1561_p7 }
  0xb4   : > { %p1567_p13 = pnand %p1565_p11, %p1562_p10 }
  0xb6   : > { %1570 = shalt.err (!%p1567_p13)
}
  0xb7   : > { %s1571_s7 = scalar_lea.vmem %s343_s26, 16  ;;  %s1578_s11 = scalar_lea.vmem %s343_s26, 32 }
  0xb8   : > { %p1572_p4 = scmp.ne.s32.totalorder %s343_s26, %s1571_s7  ;;  %p1579_p0 = scmp.lt.s32.totalorder %s343_s26, %s343_s26 }
  0xb9   : > { %p1580_p2 = scmp.lt.s32.totalorder %s1578_s11, %s1571_s7 }
  0xba   : > { %p1574_p3 = pnand %p1572_p4, %p1922_p8 }
  0xbb   : > { %p1581_p9 = por %p1580_p2, %p1579_p0 }
  0xbc   : > { %p1575_p12 = pneg %p1574_p3 }
  0xbe   : > { %p1582_p1 = pnand %p1581_p9, %p1575_p12 }
  0xc0   : > { %1585 = shalt.err (!%p1582_p1)
}
  0xc1   : > { %1306 = dma.hbm_to_vmem [thread:$0]  (!%p2354_p6), %s2302_s4, 16, %s343_s26, [#allocation10]  }
  0xc2   : > { %s1798_s14 = smov [#allocation14]   ;;  %s1799_s23 = smov [#allocation17]  }
  0xc3   : > { %s366_s19 = sshll.u32 %s1798_s14, 4  ;;  %s390_s16 = sshll.u32 %s1799_s23, 4  ;;  %s367_s19 = int_to_ptr.vmem [resolvable:$true] %s366_s19  ;;  %s391_s16 = int_to_ptr.vmem [resolvable:$true] %s390_s16 }
  0xc4   : > { %s1586_s13 = scalar_lea.hbm %s2304_s6, 32 }
  0xc5   : > { %p1587_p1 = scmp.ne.s32.totalorder %s2304_s6, %s1586_s13  ;;  %p1593_p10 = scmp.lt.u32.totalorder %s1586_s13, %s2304_s6 }
  0xc7   : > { %p1589_p5 = pnand %p1587_p1, %p1922_p8 }
  0xc9   : > { %p1590_p7 = pneg %p1589_p5 }
  0xcb   : > { %p1595_p11 = pnand %p1593_p10, %p1590_p7 }
  0xcd   : > { %1598 = shalt.err (!%p1595_p11)
}
  0xce   : > { %s1599_s26 = scalar_lea.vmem %s367_s19, 32  ;;  %p1607_p12 = scmp.lt.s32.totalorder %s367_s19, %s367_s19 }
  0xcf   : > { %p1600_p13 = scmp.ne.s32.totalorder %s367_s19, %s1599_s26  ;;  %p1608_p0 = scmp.lt.s32.totalorder %s1599_s26, %s1599_s26 }
  0xd1   : > { %p1602_p4 = pnand %p1600_p13, %p1922_p8  ;;  %p1609_p2 = por %p1608_p0, %p1607_p12 }
  0xd3   : > { %p1603_p3 = pneg %p1602_p4 }
  0xd5   : > { %p1610_p9 = pnand %p1609_p2, %p1603_p3 }
  0xd7   : > { %1613 = shalt.err (!%p1610_p9)
}
  0xd8   : > { %1312 = dma.hbm_to_vmem [thread:$0]  (!%p2354_p6), %s2304_s6, 32, %s367_s19, [#allocation13]  }
  0xd9   : > { %s1614_s15 = scalar_lea.hbm %s2307_s9, 256 }
  0xda   : > { %p1615_p1 = scmp.ne.s32.totalorder %s2307_s9, %s1614_s15  ;;  %p1621_p10 = scmp.lt.u32.totalorder %s1614_s15, %s2307_s9 }
  0xdc   : > { %p1617_p5 = pnand %p1615_p1, %p1922_p8 }
  0xde   : > { %p1618_p7 = pneg %p1617_p5 }
  0xe0   : > { %p1623_p11 = pnand %p1621_p10, %p1618_p7 }
  0xe2   : > { %1626 = shalt.err (!%p1623_p11)
}
  0xe3   : > { %s1627_s3 = scalar_lea.vmem %s391_s16, 256  ;;  %p1635_p12 = scmp.lt.s32.totalorder %s391_s16, %s391_s16 }
  0xe4   : > { %p1628_p13 = scmp.ne.s32.totalorder %s391_s16, %s1627_s3  ;;  %p1636_p0 = scmp.lt.s32.totalorder %s1627_s3, %s1627_s3 }
  0xe6   : > { %p1630_p4 = pnand %p1628_p13, %p1922_p8  ;;  %p1637_p2 = por %p1636_p0, %p1635_p12 }
  0xe8   : > { %p1631_p3 = pneg %p1630_p4 }
  0xea   : > { %p1638_p9 = pnand %p1637_p2, %p1631_p3 }
  0xec   : > { %1641 = shalt.err (!%p1638_p9)
}
  0xed   : > { %1318 = dma.hbm_to_vmem [thread:$0]  (!%p2354_p6), %s2307_s9, 256, %s391_s16, [#allocation16], %s2353_s18, %s2353_s18, %s2352_s5  }
  0xee   : > { %s1800_s1 = smov [#allocation18]   ;;  %s2355_s23 = sand.u32 1, %s1782_s21  }
  0xef   : > { %s404_s14 = sshll.u32 %s1800_s1, 4  ;;  %s1155_s27 = sshll.u32 %s2355_s23, 3  ;;  %s405_s14 = int_to_ptr.vmem [resolvable:$true] %s404_s14 }
  0xf0   : > { %s1642_s12 = scalar_lea.hbm %s2308_s10, 16 }
  0xf1   : > { %p1643_p1 = scmp.ne.s32.totalorder %s2308_s10, %s1642_s12  ;;  %p1649_p10 = scmp.lt.u32.totalorder %s1642_s12, %s2308_s10 }
  0xf3   : > { %p1645_p5 = pnand %p1643_p1, %p1922_p8 }
  0xf5   : > { %p1646_p7 = pneg %p1645_p5 }
  0xf7   : > { %p1651_p11 = pnand %p1649_p10, %p1646_p7 }
  0xf9   : > { %1654 = shalt.err (!%p1651_p11)
}
  0xfa   : > { %s1655_s5 = scalar_lea.vmem %s405_s14, 16  ;;  %s1662_s18 = scalar_lea.vmem %s405_s14, 32 }
  0xfb   : > { %p1656_p13 = scmp.ne.s32.totalorder %s405_s14, %s1655_s5  ;;  %p1663_p12 = scmp.lt.s32.totalorder %s405_s14, %s405_s14 }
  0xfc   : > { %p1664_p0 = scmp.lt.s32.totalorder %s1662_s18, %s1655_s5 }
  0xfd   : > { %p1658_p4 = pnand %p1656_p13, %p1922_p8 }
  0xfe   : > { %p1665_p2 = por %p1664_p0, %p1663_p12 }
  0xff   : > { %p1659_p3 = pneg %p1658_p4 }
 0x101   : > { %p1666_p9 = pnand %p1665_p2, %p1659_p3 }
 0x103   : > { %1669 = shalt.err (!%p1666_p9)
}
 0x104   : > { %1321 = dma.hbm_to_vmem [thread:$0]  (!%p2354_p6), %s2308_s10, 16, %s405_s14, [#allocation19]  }
 0x105   : > { %s1156_s1 = sshll.u32 %s1786_s22, 7  ;;  %s440_s23 = scalar_lea.vmem [#allocation8], %s1155_s27 }
 0x106   : > { %s447_s15 = sshll.u32 %s440_s23, 4  ;;  %s445_s12 = scalar_lea.hbm %s2300_s2, %s1156_s1  ;;  %s448_s15 = int_to_ptr.vmem [resolvable:$true] %s447_s15 }
 0x107   : > { %s1670_s7 = scalar_lea.hbm %s445_s12, 128  ;;  %p2356_p1 = scmp.ne.s32.totalorder %s2351_s29, 0 }
 0x108   : > { %p1671_p8 = scmp.ne.s32.totalorder %s445_s12, %s1670_s7  ;;  %s1675_s3 = scalar_lea.hbm %s2300_s2, 256 }
 0x109   : > { %p2357_p5 = pneg %p2356_p1  ;;  %p1676_p6 = scmp.lt.u32.totalorder %s445_s12, %s2300_s2 }
 0x10a   : > { %p1677_p11 = scmp.lt.u32.totalorder %s1675_s3, %s1670_s7  ;;  %p1679_p4 = scmp.lt.u32.totalorder %s1670_s7, %s445_s12 }
 0x10b   : > { %p1673_p7 = pnand %p1671_p8, %p2357_p5 }
 0x10c   : > { %p1678_p13 = por %p1677_p11, %p1676_p6 }
 0x10d   : > { %p1674_p10 = pneg %p1673_p7 }
 0x10e   : > { %p1680_p3 = por %p1679_p4, %p1678_p13 }
 0x110   : > { %p1681_p12 = pnand %p1680_p3, %p1674_p10 }
 0x112   : > { %1684 = shalt.err (!%p1681_p12)
}
 0x113   : > { %s1685_s27 = scalar_lea.vmem %s448_s15, 128  ;;  %p2358_p2 = pmov %p2357_p5 }
 0x114   : > { %p1686_p0 = scmp.ne.s32.totalorder %s448_s15, %s1685_s27  ;;  %s1801_s5 = smov [#allocation8]  }
 0x115   : > { %s1690_s18 = sshll.u32 %s1801_s5, 4  ;;  %s1691_s18 = int_to_ptr.vmem [resolvable:$false] %s1690_s18 }
 0x116   : > { %p1688_p9 = pnand %p1686_p0, %p2358_p2  ;;  %s1692_s16 = scalar_lea.vmem %s1691_s18, 256 }
 0x117   : > { %p1693_p5 = scmp.lt.s32.totalorder %s448_s15, %s1691_s18  ;;  %p1694_p7 = scmp.lt.s32.totalorder %s1692_s16, %s1685_s27 }
 0x118   : > { %p1689_p8 = pneg %p1688_p9 }
 0x119   : > { %p1695_p6 = por %p1694_p7, %p1693_p5 }
 0x11b   : > { %p1696_p11 = pnand %p1695_p6, %p1689_p8 }
 0x11d   : > { %1699 = shalt.err (!%p1696_p11)
}
 0x11e   : > { %1328 = dma.hbm_to_vmem [thread:$0]  (!%p2356_p1), %s445_s12, 128, %s448_s15, %s2035_s25  }
 0x11f   : > { %s2359_s26 = sld [smem:[#allocation29_spill]] }
 0x125   : > { %p2360_p10 = scmp.ne.s32.totalorder %s2359_s26, 0 }
 0x126   : > { %p2361_p13 = scmp.eq.s32.totalorder (!%p2360_p10), %s1890_s24, 0 }
 0x127   : > { %456 = sbr.rel (%p2360_p10) target bundleno = 1561 (0x619), region = 64 }
 0x12e   : > { %1745 = dma.done.wait (%p2361_p13), [#allocation4], 128   ;;  %p2362_p4 = pmov %p2361_p13 }
 0x12f   : > { %s462_s1 = sand.u32 1, %s1890_s24   ;;  %s2188_s23 = sand.u32 1, %s1778_s20  }
 0x130   : > { %1747 = vsyncadd (%p2362_p4), [#allocation4], 4294967168  ;;  %s1159_s17 = sshll.u32 %s2188_s23, 5  ;;  %s463_s29 = scalar_lea.sflag [#allocation7], %s462_s1 }
 0x131   : > { %s2191_s13 = scalar_lea.vmem [#allocation6], %s1159_s17  ;;  %p2363_p1 = scmp.ne.s32.totalorder %s2346_s30, 0 }
 0x133   : > { %1749 = dma.done.wait (%p2363_p1), %s463_s29, 640  }
 0x134   : > { %1751 = vsyncadd (%p2363_p1), %s463_s29, 4294966656  ;;  %s1160_s25 = sshll.u32 %s2188_s23, 3  ;;  %p2364_p3 = pmov %p2362_p4 }
 0x135   : > { %s475_s15 = scalar_lea.vmem [#allocation8], %s1160_s25 }
 0x136   : > { %1753 = dma.done.wait (%p2364_p3), [#allocation10], 272   ;;  %p2365_p12 = pmov %p2364_p3 }
 0x137   : > { %p2366_p0 = pmov %p2364_p3 }
 0x138   : > { %1755 = vsyncadd (%p2365_p12), [#allocation10], 4294967024 }
 0x139   : > { %1757 = dma.done.wait (%p2366_p0), [#allocation13], 544   ;;  %p2367_p2 = pmov %p2366_p0 }
 0x13a   : > { %p2368_p9 = pmov %p2366_p0 }
 0x13b   : > { %1759 = vsyncadd (%p2367_p2), [#allocation13], 4294966752 }
 0x13c   : > { %1761 = dma.done.wait (%p2368_p9), [#allocation16], 272   ;;  %p2369_p8 = pmov %p2366_p0 }
 0x13d   : > { %p2370_p5 = pmov %p2366_p0 }
 0x13e   : > { %1763 = vsyncadd (%p2369_p8), [#allocation16], 4294967024 }
 0x13f   : > { %1765 = dma.done.wait (%p2370_p5), [#allocation19], 16   ;;  %p2371_p7 = pmov %p2366_p0 }
 0x140   : > { %v1802_v0 = vmov 0   ;;  %v1398_v1 = vld [vmem:[#allocation9] sm:$0xff]   ;;  %v1399_v2 = vld [vmem:[#allocation9 + $0x8] sm:$0xff]   ;;  %vm600_vm0 = vcmask 261120   ;;  %v1400_v3 = vld [vmem:[%s2191_s13] sm:$0xff]   ;;  %v1803_v13 = vmov 0.0   ;;  %v698_v14 = vlaneseq }
 0x141   : > { %1767 = vsyncadd (%p2371_p7), [#allocation19], 4294967280  ;;  %763 = vmatprep.mubr.bf16.mxu1 %v1802_v0  ;;  %1215 = vmatprep.subr.bf16.mxu0 %v1398_v1  ;;  %v1401_v4 = vld [vmem:[%s2191_s13 + $0x8] sm:$0xff]   ;;  %v1402_v5 = vld [vmem:[%s2191_s13 + $0x10] sm:$0xff]   ;;  %vm1804_vm1 = vmmov 0   ;;  %s783_s30 = sld [smem:[#allocation2]] }
 0x142   : > { %1216 = vmatpush3.bf16.msra.mxu0 %v1398_v1  ;;  %1219 = vmatprep.mubr.msk.bf16.mxu0 %vm600_vm0, %v1400_v3  ;;  %v1404_v6 = vld [vmem:[#allocation12 + $0x4] ss:$8 sps:$4 sm:$0xff]   ;;  %v1406_v7 = vld [vmem:[#allocation12] ss:$8 sps:$4 sm:$0xff]   ;;  %v1407_v8 = vld [vmem:[#allocation12 + $0x14] ss:$8 sps:$4 sm:$0xff]  }
 0x143   : > { %1217 = vmatprep.subr.bf16.mxu0 %v1399_v2  ;;  %731 = vmatprep.subr.bf16.mxu1 %v1404_v6  ;;  %v1409_v9 = vld [vmem:[#allocation12 + $0x10] ss:$8 sps:$4 sm:$0xff]   ;;  %v690_v10 = vld [vmem:[%s475_s15] sm:$0xff]  ;;  %v699_v15 = vshrl.u32 %v698_v14, 7  ;;  %vm828_vm2 = vcmask 523264   ;;  %s1192_s12 = sshll.u32 %s1890_s24, 7 }
 0x144   : > { %732 = vmatpush1.bf16.msra.mxu1 %v1406_v7  ;;  %v691_v11 = vpack.c.bf16 %v690_v10, %v690_v10  ;;  %v1403_v12 = vld [vmem:[%s2191_s13 + $0x18] sm:$0xff]   ;;  %v696_v16 = vld [vmem:[#allocation14] sm:$0x3]  ;;  %v1169_v19 = vld [vmem:[#allocation11] ss:$0 sm:$0xff]  ;;  %s546_s7 = scalar_lea.vmem [#allocation20], %s1160_s25 }
 0x145   : > { %733 = vmatprep.subr.bf16.mxu1 %v1407_v8  ;;  %v704_v17 = vsub.s32 1, %v699_v15  ;;  %v700_v53 = vsub.s32 0, %v699_v15  ;;  %v1185_v57 = vld [vmem:[#allocation15] ss:$0 sm:$0xff]  ;;  %v826_v1 = vld [vmem:[#allocation3] sm:$0xff]  ;;  %v1410_v15 = vld [vmem:[#allocation17] sm:$0xff]  }
 0x146   : > { %1218 = vmatpush3.bf16.msra.mxu0 %v1399_v2  ;;  %s972_s28 = sshll.u32 %s546_s7, 4  ;;  %s2372_s19 = sld [smem:[#allocation37_spill]]  ;;  %s2256_s28 = int_to_ptr.vmem [resolvable:$true] %s972_s28 }
 0x147   : > { %1227 = vmatprep.subr.bf16.mxu0 %v1803_v13  ;;  %v705_v18 = vrot.slane %v696_v16, %v704_v17  ;;  %v701_v54 = vrot.slane %v696_v16, %v700_v53  ;;  %v784_v60 = vstv %s783_s30  ;;  %v1411_v17 = vld [vmem:[#allocation17 + $0x8] sm:$0xff]   ;;  %s959_s24 = scalar_lea.sflag [#allocation5], %s2188_s23  ;;  %s1700_s5 = scalar_lea.vmem %s2256_s28, 128 }
 0x148   : > { %734 = vmatpush1.bf16.msra.mxu1 %v1409_v9  ;;  %p1701_p6 = scmp.ne.s32.totalorder %s2256_s28, %s1700_s5  ;;  %p2374_p11 = scmp.ne.s32.totalorder %s2347_s8, 0 }
 0x149   : > { %1220 = vmatmul.mubr.msk.bf16.vlgmr.msra.gmra.mrb[0].mxu0 %vm600_vm0, %v1401_v4  ;;  %1239 = vmatprep.subr.bf16.mxu1 %v1803_v13  ;;  %s1805_s18 = smov [#allocation20]  }
 0x14a   : > { %1223 = vmatprep.mubr.msk.bf16.mxu0 %vm600_vm0, %v1402_v5  ;;  %p1702_p10 = pnand %p1701_p6, %p2374_p11  ;;  %s1704_s16 = sshll.u32 %s1805_s18, 4  ;;  %s1705_s16 = int_to_ptr.vmem [resolvable:$false] %s1704_s16 }
 0x14b   : > { %1184 = vmatmul.mubr.msk.bf16.vlgmr.msra.gmra.mrb[0].mxu1 %vm600_vm0, %v691_v11  ;;  %s1706_s26 = scalar_lea.vmem %s1705_s16, 256  ;;  %p1707_p4 = scmp.lt.s32.totalorder %s2256_s28, %s1705_s16 }
 0x14c   : > { %1240 = vmatpush3.bf16.msra.mxu1 %v1400_v3  ;;  %1247 = vmatprep.mubr.msk.bf16.mxu1 %vm1804_vm1, %v1803_v13  ;;  %s2373_s14 = smov %s2372_s19  ;;  %s2254_s27 = scalar_lea.hbm %s2372_s19, %s1192_s12 }
 0x14d   : > { %1241 = vmatprep.subr.bf16.mxu1 %v1803_v13  ;;  %p1703_p13 = pneg %p1702_p10  ;;  %p1708_p1 = scmp.lt.s32.totalorder %s1706_s26, %s1700_s5 }
 0x14f   : > { %p1709_p3 = por %p1708_p1, %p1707_p4 }
 0x150   : > { %1242 = vmatpush3.bf16.msra.mxu1 %v1401_v4 }
 0x151   : > { %1224 = vmatmul.mubr.msk.bf16.gmra.mrb[4].mxu0 %vm600_vm0, %v1403_v12  ;;  %1243 = vmatprep.subr.bf16.mxu1 %v1803_v13  ;;  %p1710_p12 = pnand %p1709_p3, %p1703_p13 }
 0x152   : > { %1235 = vmatprep.mubr.msk.bf16.mxu0 %vm1804_vm1, %v1803_v13 }
 0x154   : > { %1244 = vmatpush3.bf16.msra.mxu1 %v1402_v5 }
 0x155   : > { %1245 = vmatprep.subr.bf16.mxu1 %v1803_v13 }
 0x158   : > { %1246 = vmatpush3.bf16.msra.mxu1 %v1403_v12 }
 0x159   : > { %1251 = vmatprep.subr.bf16.mxu1 %v1803_v13 }
 0x21c   : > { %v1221_v20 = vpop.f32.mrb[0].mxu0 }
 0x21d   : > { %v656_v21 = vadd.f32 %v1221_v20, %v1169_v19  ;;  %v647_v22 = vpop.f32.mrb[1].mxu0 }
 0x21e   : > { %v648_v23 = vadd.f32 %v1169_v19, %v647_v22  ;;  %v1222_v24 = vpop.f32.mrb[2].mxu0  ;;  %v765_v32 = vpop.f32.mrb[0].mxu1 }
 0x21f   : > { %v659_v25 = vadd.f32 %v1222_v24, %v1169_v19  ;;  %v650_v26 = vpop.f32.mrb[3].mxu0  ;;  %v680_v28 = vmax.f32 %v656_v21, 0.0  ;;  %v767_v34 = vpop.f32.mrb[1].mxu1  ;;  %v766_v55 = vadd.f32 %v765_v32, %v701_v54 }
 0x220   : > { %v651_v27 = vadd.f32 %v1169_v19, %v650_v26  ;;  %v678_v30 = vmax.f32 %v648_v23, 0.0  ;;  %v2235_v37 = vadd.f32 %v767_v34, %v705_v18  ;;  %v769_v38 = vpop.f32.mrb[2].mxu1  ;;  %v1187_v23 = vld [vmem:[#allocation18] ss:$0 sm:$0xff] }
 0x221   : > { %v681_v29 = vmax.f32 %v659_v25, 0.0  ;;  %v770_v41 = vpop.f32.mrb[3].mxu1  ;;  %v772_v56 = vmax.f32 %v766_v55, 0.0 }
 0x222   : > { %v679_v31 = vmax.f32 %v651_v27, 0.0 }
 0x223   : > { %v687_v33 = vpack.c.bf16 %v681_v29, %v680_v28  ;;  %v781_v58 = vmul.f32 %v1185_v57, %v772_v56 }
 0x224   : > { %v686_v35 = vpack.c.bf16 %v679_v31, %v678_v30  ;;  %v1225_v36 = vpop.f32.mrb[4].mxu0 }
 0x225   : > { %v672_v39 = vadd.f32 %v1225_v36, %v1169_v19  ;;  %v663_v40 = vpop.f32.mrb[5].mxu0  ;;  %v782_v59 = vpack.c.bf16 %v781_v58, %v781_v58 }
 0x226   : > { %1228 = vmatpush3.bf16.xpose.msra.mxu0 %v686_v35  ;;  %v664_v42 = vadd.f32 %v1169_v19, %v663_v40  ;;  %v1226_v43 = vpop.f32.mrb[6].mxu0 }
 0x227   : > { %v684_v44 = vmax.f32 %v672_v39, 0.0  ;;  %v675_v45 = vadd.f32 %v1226_v43, %v1169_v19  ;;  %v666_v46 = vpop.f32.mrb[7].mxu0  ;;  %1229 = vmatprep.subr.bf16.mxu0 %v1803_v13 }
 0x228   : > { %v682_v47 = vmax.f32 %v664_v42, 0.0  ;;  %v667_v48 = vadd.f32 %v1169_v19, %v666_v46 }
 0x229   : > { %v685_v49 = vmax.f32 %v675_v45, 0.0 }
 0x22a   : > { %v683_v50 = vmax.f32 %v667_v48, 0.0 }
 0x22b   : > { %v689_v51 = vpack.c.bf16 %v685_v49, %v684_v44 }
 0x22c   : > { %v688_v52 = vpack.c.bf16 %v683_v50, %v682_v47 }
 0x22e   : > { %1230 = vmatpush3.bf16.xpose.msra.mxu0 %v687_v33 }
 0x22f   : > { %1231 = vmatprep.subr.bf16.mxu0 %v1803_v13 }
 0x236   : > { %1232 = vmatpush3.bf16.xpose.msra.mxu0 %v688_v52 }
 0x237   : > { %1233 = vmatprep.subr.bf16.mxu0 %v1803_v13 }
 0x23e   : > { %1234 = vmatpush3.bf16.xpose.msra.mxu0 %v689_v51 }
 0x245   : > { %1236 = vmatmul.mubr.bf16.vlgmr.msra.gmra.mrb[8].mxu0 %v782_v59 }
 0x318   : > { %v819_v61 = vpop.f32.mrb[8].mxu0 }
 0x319   : > { %v820_v62 = vadd.f32 %v819_v61, %v784_v60  ;;  %v1237_v63 = vpop.f32.mrb[9].mxu0 }
 0x31a   : > { %v822_v0 = vpop.f32.mrb[10].mxu0 }
 0x31b   : > { %v825_v2 = vmax.f32 %v820_v62, 0.0  ;;  %v1238_v3 = vpop.f32.mrb[11].mxu0 }
 0x31d   : > { %v827_v4 = vadd.f32 %v826_v1, %v825_v2 }
 0x31f   : > { %v829_v5 = vsel %vm828_vm2, %v827_v4, -inf }
 0x320   : > { %830 = vmax.xlane.f32.xlu0 %v829_v5 }
 0x3ad   : > { %v831_v6 = vpop.xlane.xlu0 %830 }
 0x3ae   : > { %v832_v7 = vsub.f32 %v827_v4, %v831_v6 }
 0x3b0   : > { %v833_v8 = vmul.f32 1.442695, %v832_v7 }
 0x3b2   : > { %1412 = vpow2.f32 %v833_v8 }
 0x3bc   : > { %v1413_v9 = vpop.eup %1412 }
 0x3bd   : > { %v835_v10 = vsel %vm828_vm2, %v1413_v9, 0.0 }
 0x3be   : > { %836 = vadd.xlane.f32.xlu0 %v835_v10 }
 0x44b   : > { %v837_v11 = vpop.xlane.xlu0 %836 }
 0x44c   : > { %1414 = vrcp.f32 %v837_v11 }
 0x456   : > { %v1415_v12 = vpop.eup %1414 }
 0x457   : > { %v839_v14 = vmul.f32 %v1415_v12, %v1413_v9 }
 0x459   : > { %v840_v16 = vpack.c.bf16 %v839_v14, %v839_v14 }
 0x45b   : > { %1248 = vmatmul.mubr.msk.bf16.vlgmr.msra.gmra.mrb[4].mxu1 %vm828_vm2, %v840_v16 }
 0x45c   : > { %1252 = vmatpush3.bf16.msra.mxu1 %v1410_v15  ;;  %1255 = vmatprep.mubr.msk.bf16.mxu1 %vm1804_vm1, %v1803_v13 }
 0x45d   : > { %1253 = vmatprep.subr.bf16.mxu1 %v1803_v13  ;;  %v773_v13 = vmax.f32 %v2235_v37, 0.0 }
 0x460   : > { %1254 = vmatpush3.bf16.msra.mxu1 %v1411_v17 }
 0x52e   : > { %v882_v18 = vpop.f32.mrb[4].mxu1 }
 0x52f   : > { %v888_v19 = vpack.c.bf16 %v882_v18, %v882_v18  ;;  %v1249_v20 = vpop.f32.mrb[5].mxu1 }
 0x530   : > { %v885_v21 = vpop.f32.mrb[6].mxu1 }
 0x531   : > { %v1250_v22 = vpop.f32.mrb[7].mxu1  ;;  %1256 = vmatmul.mubr.msk.bf16.vlgmr.msra.gmra.mrb[8].mxu1 %vm600_vm0, %v888_v19 }
 0x604   : > { %v949_v24 = vpop.f32.mrb[8].mxu1 }
 0x605   : > { %v950_v25 = vadd.f32 %v1187_v23, %v949_v24  ;;  %v1257_v26 = vpop.f32.mrb[9].mxu1 }
 0x606   : > { %v952_v27 = vpop.f32.mrb[10].mxu1 }
 0x607   : > { %v955_v28 = vmax.f32 %v950_v25, 0.0  ;;  %v1258_v29 = vpop.f32.mrb[11].mxu1 }
 0x609   : > { %v956_v30 = vmul.f32 %v955_v28, %v773_v13 }
 0x60b   : > { %957 = vst [vmem:[%s546_s7] sm:$0xff] %v956_v30 }
 0x60c   : > { %1713 = shalt.err (!%p1710_p12)
}
 0x60d   : > { %s1714_s1 = scalar_lea.hbm %s2254_s27, 128  ;;  %s1718_s29 = scalar_lea.hbm %s2373_s14, 256 }
 0x60e   : > { %p1715_p0 = scmp.ne.s32.totalorder %s2254_s27, %s1714_s1  ;;  %p1719_p8 = scmp.lt.u32.totalorder %s2254_s27, %s2373_s14 }
 0x60f   : > { %p1720_p5 = scmp.lt.u32.totalorder %s1718_s29, %s1714_s1  ;;  %p1722_p6 = scmp.lt.u32.totalorder %s1714_s1, %s2254_s27 }
 0x610   : > { %p1716_p2 = pnand %p1715_p0, %p2374_p11 }
 0x611   : > { %p1721_p7 = por %p1720_p5, %p1719_p8 }
 0x612   : > { %p1717_p9 = pneg %p1716_p2 }
 0x613   : > { %p1723_p10 = por %p1722_p6, %p1721_p7 }
 0x615   : > { %p1724_p13 = pnand %p1723_p10, %p1717_p9 }
 0x617   : > { %1727 = shalt.err (!%p1724_p13)
}
 0x618   : > { %1295 = dma.vmem_to_hbm [thread:$0]  (%p2374_p11), %s2256_s28, 128, %s2254_s27, %s959_s24  }
 0x619 PF: > { %s2375_s15 = sld [smem:[#allocation28_spill]]  ;;  %s2376_s30 = sld [smem:[#allocation32_spill]] }
 0x61a   : > { %p2378_p1 = scmp.ge.s32.totalorder %s1786_s22, 2 }
 0x61f   : > { %s984_s12 = sand.u32 1, %s2375_s15   ;;  %p2377_p4 = scmp.ne.s32.totalorder %s2376_s30, 0 }
 0x620   : > { %s985_s7 = scalar_lea.sflag [#allocation5], %s984_s12 }
 0x621   : > { %p1330_p3 = pnand %p2378_p1, %p2377_p4 }
 0x623   : > { %1769 = dma.done.wait (!%p1330_p3), %s985_s7, 128  }
 0x624   : > { %1771 = vsyncadd (!%p1330_p3), %s985_s7, 4294967168  ;;  %s2379_s22 = sld [smem:[#allocation30_spill]]  ;;  %s2380_s11 = sld [smem:[#allocation31_spill]] }
 0x625   : > { %s2381_s19 = smov %s1778_s20  ;;  %s2382_s20 = smov %s1782_s21 }
 0x62a   : > { %p30_p12 = scmp.ge.s32.totalorder %s2379_s22, 4   ;;  %s2383_s21 = smov %s2380_s11 }
 0x62c   :  { %32 = sbr.rel (!%p30_p12) target bundleno = 17 (0x11), region = 153 }
 0x633   :  { %990 = vsyncpa [#allocation4], 1 }
 0x634   :  { %992 = vsyncpa [#allocation4 + $0x1], 1 }
 0x635   :  { %993 = vsyncpa [#allocation7], 1 }
 0x636   :  { %995 = vsyncpa [#allocation7 + $0x1], 1 }
 0x637   :  { %996 = vsyncpa [#allocation10], 1 }
 0x638   :  { %997 = vsyncpa [#allocation13], 1 }
 0x639   :  { %998 = vsyncpa [#allocation16], 1 }
 0x63a   :  { %999 = vsyncpa [#allocation19], 1 }
 0x63b   :  { %1000 = vsyncpa [#allocation5], 1 }
 0x63c   :  { %1002 = vsyncpa [#allocation5 + $0x1], 1 }

</bundles_post_ra>
